<compile_context>
chip_gen: v5e
topology: v5e:2x2
jax: 0.10.0
libtpu: 0.0.40
codegen_flags: <defaults>
</compile_context>

<pallas_src>
import jax
import jax.numpy as jnp
from jax.experimental import pallas as pl
from jax.experimental.pallas import tpu as pltpu


def _round_up(x, m):
    return (x + m - 1) // m * m


def _vmem_capacity_bytes():
    try:
        return int(pltpu.get_tpu_info().vmem_capacity_bytes)
    except Exception:
        return 64 * 2**20  # conservative fallback: v7x per-TensorCore VMEM


# ---------------------------------------------------------------------------
# Kernels (shared body: two MXU dots, relu / sigmoid gate, fused f32 epilogue)
# ---------------------------------------------------------------------------
def _highway_body(xk_ref, w1_ref, w2_ref, b1_ref, b2_ref, xn_ref, o_ref):
    x = xk_ref[...]                                            # [tb, K]
    h1 = jnp.dot(x, w1_ref[...],
                 preferred_element_type=jnp.float32) + b1_ref[...]
    h2 = jnp.dot(x, w2_ref[...],
                 preferred_element_type=jnp.float32) + b2_ref[...]
    x0 = jnp.maximum(h1, 0.0)                                  # relu   (VPU)
    g = jax.nn.sigmoid(h2)                                     # gate   (EUP)
    xn = xn_ref[...].astype(jnp.float32)
    # x0*g + x*(1-g) == x + g*(x0 - x): one fewer VPU multiply, f32 epilogue.
    o_ref[...] = (xn + g * (x0 - xn)).astype(o_ref.dtype)


def _highway_resident_kernel(x_ref, w1_ref, w2_ref, b1_ref, b2_ref, o_ref):
    # Resident weights: the same x tile feeds the matmul and the combine.
    _highway_body(x_ref, w1_ref, w2_ref, b1_ref, b2_ref, x_ref, o_ref)


def _highway_tiled_kernel(xk_ref, w1_ref, w2_ref, b1_ref, b2_ref, xn_ref, o_ref):
    # N-tiled weights: xk = full feature row, xn = the output-column slice.
    _highway_body(xk_ref, w1_ref, w2_ref, b1_ref, b2_ref, xn_ref, o_ref)


# ---------------------------------------------------------------------------
# Parameter packing (hoisted off the per-call path)
# ---------------------------------------------------------------------------
def pack_highway_params(w1, b1, w2, b2, compute_dtype=None):
    """Pre-transpose PyTorch Linear weights (y = x @ W.T -> x @ Wt) once.

    Weights follow the activation compute dtype (bf16 x -> bf16 weights for
    native MXU rate); biases stay f32 (added to the f32 accumulator).
    """
    if compute_dtype is None:
        compute_dtype = w1.dtype
    w1t = jnp.asarray(w1, compute_dtype).T
    w2t = jnp.asarray(w2, compute_dtype).T
    b1r = jnp.asarray(b1, jnp.float32).reshape(1, -1)
    b2r = jnp.asarray(b2, jnp.float32).reshape(1, -1)
    return w1t, w2t, b1r, b2r


# ---------------------------------------------------------------------------
# Tiling heuristics
# ---------------------------------------------------------------------------
def _pick_batch_tile(B, size, itemsize, want_split):
    if B <= 8:
        return B                                    # single full-batch block
    # ~1.5 MiB per x tile keeps the ~0.35us per-grid-step overhead negligible.
    target = max(8, (3 * 2**20) // max(1, 2 * size * itemsize))
    tile_b = min(1024, _round_up(target, 8))
    if want_split and B >= 16:
        # >= 2 grid steps so dimension_semantics=("parallel",) can shard the
        # batch across v7x's two TensorCores.
        tile_b = min(tile_b, _round_up((B + 1) // 2, 8))
    if B % 8 == 0:
        tile_b = min(tile_b, B)
    else:
        tile_b = min(tile_b, max(8, (B // 8) * 8))  # partial last block masked
    return max(8, tile_b)


# ---------------------------------------------------------------------------
# Launchers
# ---------------------------------------------------------------------------
def _highway_resident(x, w1t, w2t, b1, b2, vmem_cap):
    B, size = x.shape
    xbytes = x.dtype.itemsize
    wbytes = w1t.dtype.itemsize
    tile_b = _pick_batch_tile(B, size, xbytes, want_split=True)
    grid = (pl.cdiv(B, tile_b),)

    # Count per-BlockSpec double buffers, including the "resident" weights.
    needed = (2 * 2 * size * size * wbytes        # w1t, w2t
              + 2 * 2 * size * 4                  # b1, b2
              + 2 * 2 * tile_b * size * xbytes    # x & out tiles
              + (2 << 20))                        # headroom
    vmem_limit = int(min(0.85 * vmem_cap, max(needed, 16 * 2**20)))

    return pl.pallas_call(
        _highway_resident_kernel,
        out_shape=jax.ShapeDtypeStruct((B, size), x.dtype),
        grid_spec=pltpu.PrefetchScalarGridSpec(
            num_scalar_prefetch=0,
            grid=grid,
            in_specs=[
                pl.BlockSpec((tile_b, size), lambda i: (i, 0)),   # x tile
                pl.BlockSpec((size, size), lambda i: (0, 0)),     # w1t (resident)
                pl.BlockSpec((size, size), lambda i: (0, 0)),     # w2t (resident)
                pl.BlockSpec((1, size), lambda i: (0, 0)),        # b1
                pl.BlockSpec((1, size), lambda i: (0, 0)),        # b2
            ],
            out_specs=pl.BlockSpec((tile_b, size), lambda i: (i, 0)),
        ),
        compiler_params=pltpu.CompilerParams(
            dimension_semantics=("parallel",),
            vmem_limit_bytes=vmem_limit,
        ),
    )(x, w1t, w2t, b1, b2)


def _highway_tiled(x, w1t, w2t, b1, b2, vmem_cap):
    """Fallback for large `size`: tile the output-feature dim, full-K dots."""
    B, size = x.shape
    xbytes = x.dtype.itemsize
    wbytes = w1t.dtype.itemsize
    tile_n = 256 if size >= 2048 else 128

    budget = int(0.8 * vmem_cap)
    fixed = 2 * 2 * size * tile_n * wbytes + 2 * 2 * tile_n * 4
    per_row = 2 * (size * xbytes + 2 * tile_n * xbytes) + 64
    tile_b_cap = max(8, ((budget - fixed) // per_row // 8) * 8)
    tile_b = min(512, tile_b_cap)
    if B <= 8:
        tile_b = B
    elif B % 8 == 0:
        tile_b = min(tile_b, B)
    else:
        tile_b = min(tile_b, max(8, (B // 8) * 8))

    grid = (pl.cdiv(B, tile_b), pl.cdiv(size, tile_n))
    needed = (fixed
              + 2 * tile_b * size * xbytes            # x row tile
              + 2 * 2 * tile_b * tile_n * xbytes      # x column tile & out tile
              + (2 << 20))
    vmem_limit = int(min(0.85 * vmem_cap, max(needed, 16 * 2**20)))

    return pl.pallas_call(
        _highway_tiled_kernel,
        out_shape=jax.ShapeDtypeStruct((B, size), x.dtype),
        grid_spec=pltpu.PrefetchScalarGridSpec(
            num_scalar_prefetch=0,
            grid=grid,
            in_specs=[
                pl.BlockSpec((tile_b, size), lambda b, n: (b, 0)),    # x rows (full K)
                pl.BlockSpec((size, tile_n), lambda b, n: (0, n)),    # w1t col tile
                pl.BlockSpec((size, tile_n), lambda b, n: (0, n)),    # w2t col tile
                pl.BlockSpec((1, tile_n), lambda b, n: (0, n)),       # b1
                pl.BlockSpec((1, tile_n), lambda b, n: (0, n)),       # b2
                pl.BlockSpec((tile_b, tile_n), lambda b, n: (b, n)),  # x combine cols
            ],
            out_specs=pl.BlockSpec((tile_b, tile_n), lambda b, n: (b, n)),
        ),
        compiler_params=pltpu.CompilerParams(
            dimension_semantics=("parallel", "parallel"),
            vmem_limit_bytes=vmem_limit,
        ),
    )(x, w1t, w2t, b1, b2, x)


def highway_apply(x, w1t, w2t, b1, b2, *, force_tiled=False):
    """x: [B, size]; params from pack_highway_params (packed once, reused)."""
    B, size = x.shape
    vmem_cap = _vmem_capacity_bytes()
    wbytes = w1t.dtype.itemsize
    resident_weight_bytes = 2 * 2 * size * size * wbytes   # incl. double buffers
    use_tiled = force_tiled or resident_weight_bytes > int(0.5 * vmem_cap)
    if use_tiled and size >= 128:
        return _highway_tiled(x, w1t, w2t, b1, b2, vmem_cap)
    return _highway_resident(x, w1t, w2t, b1, b2, vmem_cap)


def highway(x, w1, b1, w2, b2):
    """Convenience wrapper matching the PyTorch parameter layout.

    Re-packs the weights on every call; in a real loop pack once with
    pack_highway_params and call highway_apply.
    """
    packed = pack_highway_params(w1, b1, w2, b2, compute_dtype=x.dtype)
    return highway_apply(x, *packed)


def highway_ref(x, w1, b1, w2, b2):
    h1 = jnp.maximum(x @ w1.T + b1, 0.0)
    h2 = jax.nn.sigmoid(x @ w2.T + b2)
    return h1 * h2 + x * (1.0 - h2)


if __name__ == "__main__":
    root = jax.random.PRNGKey(0)

    def make_params(size, key):
        k1, k2, k3, k4 = jax.random.split(key, 4)
        bound = 1.0 / (size ** 0.5)  # nn.Linear default uniform init range
        w1 = jax.random.uniform(k1, (size, size), jnp.float32, -bound, bound)
        b1 = jax.random.uniform(k2, (size,), jnp.float32, -bound, bound)
        w2 = jax.random.uniform(k3, (size, size), jnp.float32, -bound, bound)
        b2 = jax.random.uniform(k4, (size,), jnp.float32, -bound, bound)
        return w1, b1, w2, b2

    def check(B, size, key, force_tiled=False, tol=1e-5):
        kx, kp = jax.random.split(key)
        x = jax.random.normal(kx, (B, size), dtype=jnp.float32)
        w1, b1, w2, b2 = make_params(size, kp)
        packed = pack_highway_params(w1, b1, w2, b2, compute_dtype=x.dtype)
        out = highway_apply(x, *packed, force_tiled=force_tiled)
        jax.block_until_ready(out)
        ref = highway_ref(x, w1, b1, w2, b2)
        assert out.shape == (B, size)
        assert jnp.allclose(out, ref, atol=tol, rtol=tol), (
            f"mismatch vs reference (B={B}, size={size}, tiled={force_tiled})")

    k1, k2, k3 = jax.random.split(root, 3)
    check(8, 32, k1)                                  # tiny, resident path
    check(64, 128, k2, tol=1e-4)                      # multi-step batch grid
    check(64, 256, k3, force_tiled=True, tol=1e-4)    # N-tiled fallback path

    print("KERNEL_OK")
</pallas_src>

<mosaic_0001>
module attributes {stable_mosaic.version = 11 : i64} {
  func.func @_highway_resident_kernel(%arg0: i32, %arg1: memref<8x32xf32, #tpu.memory_space<vmem>>, %arg2: memref<32x32xf32, #tpu.memory_space<vmem>>, %arg3: memref<32x32xf32, #tpu.memory_space<vmem>>, %arg4: memref<1x32xf32, #tpu.memory_space<vmem>>, %arg5: memref<1x32xf32, #tpu.memory_space<vmem>>, %arg6: memref<8x32xf32, #tpu.memory_space<vmem>>) attributes {dimension_semantics = [#tpu.dimension_semantics<parallel>], iteration_bounds = array<i64: 1>, scalar_prefetch = 0 : i64, scratch_operands = 0 : i64, tpu.core_type = #tpu.core_type<tc>, window_params = [{transform_indices = @transform_0, window_bounds = array<i64: 8, 32>}, {pipeline_mode = #tpu.pipeline_mode<synchronous>, transform_indices = @transform_1, window_bounds = array<i64: 32, 32>}, {pipeline_mode = #tpu.pipeline_mode<synchronous>, transform_indices = @transform_2, window_bounds = array<i64: 32, 32>}, {pipeline_mode = #tpu.pipeline_mode<synchronous>, transform_indices = @transform_3, window_bounds = array<i64: 1, 32>}, {pipeline_mode = #tpu.pipeline_mode<synchronous>, transform_indices = @transform_4, window_bounds = array<i64: 1, 32>}, {transform_indices = @transform_5, window_bounds = array<i64: 8, 32>}]} {
    %c0 = arith.constant 0 : index
    %c0_0 = arith.constant 0 : index
    %0 = vector.load %arg1[%c0, %c0_0] : memref<8x32xf32, #tpu.memory_space<vmem>>, vector<8x32xf32>
    %c0_1 = arith.constant 0 : index
    %c0_2 = arith.constant 0 : index
    %1 = vector.load %arg2[%c0_1, %c0_2] : memref<32x32xf32, #tpu.memory_space<vmem>>, vector<32x32xf32>
    %cst = arith.constant dense<0.000000e+00> : vector<8x32xf32>
    %2 = tpu.matmul %0, %1, %cst {dimension_numbers = #tpu.dot_dimension_numbers<[1], [0], [0], [1], [0, 0, 1, 1], [], []>} : vector<8x32xf32>, vector<32x32xf32>, vector<8x32xf32> -> vector<8x32xf32>
    %c0_3 = arith.constant 0 : index
    %c0_4 = arith.constant 0 : index
    %3 = vector.load %arg4[%c0_3, %c0_4] : memref<1x32xf32, #tpu.memory_space<vmem>>, vector<1x32xf32>
    %4 = vector.broadcast %3 : vector<1x32xf32> to vector<8x32xf32>
    %5 = arith.addf %2, %4 : vector<8x32xf32>
    %c0_5 = arith.constant 0 : index
    %c0_6 = arith.constant 0 : index
    %6 = vector.load %arg3[%c0_5, %c0_6] : memref<32x32xf32, #tpu.memory_space<vmem>>, vector<32x32xf32>
    %cst_7 = arith.constant dense<0.000000e+00> : vector<8x32xf32>
    %7 = tpu.matmul %0, %6, %cst_7 {dimension_numbers = #tpu.dot_dimension_numbers<[1], [0], [0], [1], [0, 0, 1, 1], [], []>} : vector<8x32xf32>, vector<32x32xf32>, vector<8x32xf32> -> vector<8x32xf32>
    %c0_8 = arith.constant 0 : index
    %c0_9 = arith.constant 0 : index
    %8 = vector.load %arg5[%c0_8, %c0_9] : memref<1x32xf32, #tpu.memory_space<vmem>>, vector<1x32xf32>
    %9 = vector.broadcast %8 : vector<1x32xf32> to vector<8x32xf32>
    %10 = arith.addf %7, %9 : vector<8x32xf32>
    %cst_10 = arith.constant 0.000000e+00 : f32
    %11 = vector.broadcast %cst_10 : f32 to vector<8x32xf32>
    %12 = arith.maximumf %5, %11 : vector<8x32xf32>
    %13 = arith.negf %10 : vector<8x32xf32>
    %14 = math.exp %13 : vector<8x32xf32>
    %cst_11 = arith.constant 1.000000e+00 : f32
    %15 = vector.broadcast %cst_11 : f32 to vector<8x32xf32>
    %16 = arith.addf %15, %14 : vector<8x32xf32>
    %17 = arith.divf %15, %16 : vector<8x32xf32>
    %c0_12 = arith.constant 0 : index
    %c0_13 = arith.constant 0 : index
    %18 = vector.load %arg1[%c0_12, %c0_13] : memref<8x32xf32, #tpu.memory_space<vmem>>, vector<8x32xf32>
    %19 = arith.subf %12, %18 : vector<8x32xf32>
    %20 = arith.mulf %17, %19 : vector<8x32xf32>
    %21 = arith.addf %18, %20 : vector<8x32xf32>
    %c0_14 = arith.constant 0 : index
    %c0_15 = arith.constant 0 : index
    %22 = vector.load %arg6[%c0_14, %c0_15] : memref<8x32xf32, #tpu.memory_space<vmem>>, vector<8x32xf32>
    tpu.vector_store %arg6[%c0_14, %c0_15], %21 {strides = array<i32>} : memref<8x32xf32, #tpu.memory_space<vmem>>, vector<8x32xf32>,
    return
  }
  func.func @transform_0(%arg0: i32) -> (i32, i32) {
    %c0_i32 = arith.constant 0 : i32
    %c0_i32_0 = arith.constant 0 : i32
    return %arg0, %c0_i32 : i32, i32
  }
  func.func @transform_1(%arg0: i32) -> (i32, i32) {
    %c0_i32 = arith.constant 0 : i32
    %c0_i32_0 = arith.constant 0 : i32
    %c0_i32_1 = arith.constant 0 : i32
    return %c0_i32, %c0_i32_0 : i32, i32
  }
  func.func @transform_2(%arg0: i32) -> (i32, i32) {
    %c0_i32 = arith.constant 0 : i32
    %c0_i32_0 = arith.constant 0 : i32
    %c0_i32_1 = arith.constant 0 : i32
    return %c0_i32, %c0_i32_0 : i32, i32
  }
  func.func @transform_3(%arg0: i32) -> (i32, i32) {
    %c0_i32 = arith.constant 0 : i32
    %c0_i32_0 = arith.constant 0 : i32
    %c0_i32_1 = arith.constant 0 : i32
    return %c0_i32, %c0_i32_0 : i32, i32
  }
  func.func @transform_4(%arg0: i32) -> (i32, i32) {
    %c0_i32 = arith.constant 0 : i32
    %c0_i32_0 = arith.constant 0 : i32
    %c0_i32_1 = arith.constant 0 : i32
    return %c0_i32, %c0_i32_0 : i32, i32
  }
  func.func @transform_5(%arg0: i32) -> (i32, i32) {
    %c0_i32 = arith.constant 0 : i32
    %c0_i32_0 = arith.constant 0 : i32
    return %arg0, %c0_i32 : i32, i32
  }
}

</mosaic_0001>

<bundles_post_ra>
// kernel: tpu_custom_call.1
= control target key start
LH: loop header
LB: loop body
LE: loop exit
PB: predicated region body
PF: predicated region fallthrough
CT: control target
= control target key end

     0   :  { %10 = vsyncpa [#allocation3], 0  ;;  %s343_s0 = inlined_call_operand.hbm [shape: f32[8,32], index: 0, kind: input, shape index: {}]   ;;  %s344_s1 = inlined_call_operand.hbm [shape: f32[32,32], index: 1, kind: input, shape index: {}]   ;;  %s345_s2 = inlined_call_operand.hbm [shape: f32[32,32], index: 2, kind: input, shape index: {}]   ;;  %s346_s3 = inlined_call_operand.vmem [shape: f32[1,32], index: 3, kind: input, shape index: {}]   ;;  %s347_s4 = inlined_call_operand.vmem [shape: f32[1,32], index: 4, kind: input, shape index: {}]   ;;  %s348_s5 = inlined_call_operand.hbm [shape: f32[8,32], index: 5, kind: output, shape index: {}]  }
   0x1   :  { %11 = vsyncpa [#allocation6], 0  ;;  %s28_s20 = sshll.u32 %s344_s1, 4  ;;  %s29_s20 = int_to_ptr.hbm [resolvable:$true] %s28_s20 }
   0x2   :  { %12 = vsyncpa [#allocation4], 0  ;;  %s286_s21 = smov [#allocation5]   ;;  %s18_s25 = sshll.u32 %s343_s0, 4  ;;  %s19_s25 = int_to_ptr.hbm [resolvable:$true] %s18_s25 }
   0x3   :  { %s30_s22 = sshll.u32 %s286_s21, 4  ;;  %s287_s26 = smov 128   ;;  %s31_s22 = int_to_ptr.vmem [resolvable:$true] %s30_s22 }
   0x4   :  { %s288_s27 = smov 8   ;;  %s289_s28 = smov [#allocation2]  }
   0x5   :  { %36 = dma.hbm_to_vmem [thread:$0]  %s29_s20, 512, %s31_s22, [#allocation6], %s287_s26, %s287_s26, %s288_s27  }
   0x6   :  { %s20_s29 = sshll.u32 %s289_s28, 4  ;;  %s41_s7 = sshll.u32 %s345_s2, 4  ;;  %s21_s29 = int_to_ptr.vmem [resolvable:$true] %s20_s29  ;;  %s42_s7 = int_to_ptr.hbm [resolvable:$true] %s41_s7 }
   0x7   :  { %23 = dma.hbm_to_vmem [thread:$0]  %s19_s25, 128, %s21_s29, [#allocation3]  }
   0x8   :  { %s290_s1 = smov [#allocation7]  }
   0x9   :  { %s43_s8 = sshll.u32 %s290_s1, 4  ;;  %s44_s8 = int_to_ptr.vmem [resolvable:$true] %s43_s8 }
   0xa   :  { %49 = dma.hbm_to_vmem [thread:$0]  %s42_s7, 512, %s44_s8, [#allocation6], %s287_s26, %s287_s26, %s288_s27  }
   0xb   :  { %280 = dma.done.wait [#allocation3], 128  }
   0xc   :  { %281 = vsyncadd [#allocation3], 4294967168 }
   0xd   :  { %282 = dma.done.wait [#allocation6], 1024  }
   0xe   :  { %283 = vsyncadd [#allocation6], 4294966272  ;;  %v102_v0 = vld [vmem:[#allocation7 + $0x18] sm:$0xff]  ;;  %v101_v1 = vld [vmem:[#allocation7 + $0x10] sm:$0xff]  ;;  %vm75_vm0 = vcmask 261120   ;;  %s158_s13 = sshll.u32 %s348_s5, 4  ;;  %s159_s13 = int_to_ptr.hbm [resolvable:$true] %s158_s13 }
   0xf   :  { %119 = vmatpush.msra.mxu1 %v102_v0  ;;  %v70_v2 = vld [vmem:[#allocation5 + $0x18] sm:$0xff]  ;;  %v100_v3 = vld [vmem:[#allocation7 + $0x8] sm:$0xff]  ;;  %v69_v4 = vld [vmem:[#allocation5 + $0x10] sm:$0xff] }
  0x10   :  { %91 = vmatpush.msra.mxu0 %v70_v2  ;;  %v68_v5 = vld [vmem:[#allocation5 + $0x8] sm:$0xff]  ;;  %v99_v6 = vld [vmem:[#allocation7] sm:$0xff]  ;;  %v66_v7 = vld [vmem:[#allocation2] sm:$0xff] }
  0x11   :  { %120 = vmatpush.msra.mxu1 %v101_v1  ;;  %v67_v8 = vld [vmem:[#allocation5] sm:$0xff]  ;;  %v178_v9 = vld [vmem:[%s347_s4] ss:$0 sm:$0xff]  ;;  %s291_s4 = smov [#allocation8]  }
  0x12   :  { %92 = vmatpush.msra.mxu0 %v69_v4  ;;  %v179_v15 = vld [vmem:[%s346_s3] ss:$0 sm:$0xff]  ;;  %s156_s3 = sshll.u32 %s291_s4, 4  ;;  %s157_s3 = int_to_ptr.vmem [resolvable:$true] %s156_s3 }
  0x13   :  { %121 = vmatpush.msra.mxu1 %v100_v3 }
  0x14   :  { %93 = vmatpush.msra.mxu0 %v68_v5 }
  0x15   :  { %122 = vmatpush.msra.mxu1 %v99_v6 }
  0x16   :  { %170 = vmatmul.msk.f32.vlgmr.msra.gmra.mxu1 %vm75_vm0, %v66_v7  ;;  %94 = vmatpush.msra.mxu0 %v67_v8 }
  0x17   :  { %169 = vmatmul.msk.f32.vlgmr.msra.gmra.mxu0 %vm75_vm0, %v66_v7 }
  0x93   :  { %v124_v10 = vpop.f32.mrf.mxu1 }
  0x94   :  { %v125_v11 = vadd.f32 %v178_v9, %v124_v10  ;;  %v96_v16 = vpop.f32.mrf.mxu0 }
  0x95   :  { %v97_v17 = vadd.f32 %v179_v15, %v96_v16 }
  0x96   :  { %v171_v12 = vmul.f32 -1.442695, %v125_v11 }
  0x97   :  { %v127_v21 = vmax.f32 %v97_v17, 0.0 }
  0x98   :  { %180 = vpow2.f32 %v171_v12 }
  0x99   :  { %v147_v26 = vsub.f32 %v127_v21, %v66_v7 }
  0x9e   :  { %v181_v13 = vpop.eup %180 }
  0x9f   :  { %v131_v14 = vadd.f32 1.0, %v181_v13 }
  0xa1   :  { %182 = vrcp.f32 %v131_v14  ;;  %v143_v22 = vand.u32 2147483648, %v131_v14  ;;  %v141_v24 = vand.u32 2147483647, %v131_v14  ;;  %vm137_vm2 = vweird.f32 %v131_v14 }
  0xa3   :  { %v144_v27 = vor.u32 1.1754944e-38, %v143_v22  ;;  %vm142_vm4 = vcmp.eq.f32.partialorder %v141_v24, 8.507059e+37 }
  0xa7   :  { %v183_v18 = vpop.eup %182 }
  0xa8   :  { %v133_v19 = vmul.f32 %v183_v18, %v131_v14  ;;  %vm138_vm1 = vweird.f32 %v183_v18 }
  0xa9   :  { %vm139_vm3 = vmor %vm137_vm2, %vm138_vm1 }
  0xaa   :  { %v134_v20 = vsub.f32 1.0, %v133_v19 }
  0xac   :  { %v135_v23 = vmul.f32 %v183_v18, %v134_v20 }
  0xae   :  { %v136_v25 = vadd.f32 %v183_v18, %v135_v23 }
  0xb0   :  { %v140_v28 = vsel %vm139_vm3, %v183_v18, %v136_v25 }
  0xb1   :  { %v145_v29 = vsel %vm142_vm4, %v144_v27, %v140_v28 }
  0xb2   :  { %v148_v30 = vmul.f32 %v147_v26, %v145_v29 }
  0xb4   :  { %v149_v31 = vadd.f32 %v148_v30, %v66_v7 }
  0xb6   :  { %150 = vst.msk [vmem:[#allocation8] sm:$0xff] %vm75_vm0, %v149_v31 }
  0xb7   :  { %161 = dma.vmem_to_hbm [thread:$0]  %s157_s3, 128, %s159_s13, [#allocation4]  }
  0xb8   :  { %284 = dma.done.wait [#allocation4], 128  }
  0xb9   :  { %285 = vsyncadd [#allocation4], 4294967168 }
  0xba   :  { %166 = vsyncpa [#allocation3], 1 }
  0xbb   :  { %167 = vsyncpa [#allocation6], 1 }
  0xbc   :  { %168 = vsyncpa [#allocation4], 1 }

</bundles_post_ra>
